<compile_context>
chip_gen: v7x
topology: tpu7x:2x2x1
jax: 0.10.0
libtpu: 0.0.40
codegen_flags: <defaults>
</compile_context>

<pallas_src>
import functools

import numpy as np
import jax
import jax.numpy as jnp
from jax.experimental import pallas as pl
from jax.experimental.pallas import tpu as pltpu


def _round_up(x, m):
    return (x + m - 1) // m * m


def _triplet_ce_kernel(pos_ref, neg_ref, perm_ref, shuf_ref, *, L):
    """One grid step processes TB independent triplets (sublane = triplet).

    pos_ref : VMEM (TB, 1)   f32  anchor_pos per triplet
    neg_ref : VMEM (TB, L-1) f32  anchor_neg per triplet
    perm_ref: VMEM (TB, L)   i32  permutation of [0, L) per triplet
    shuf_ref: VMEM (TB, L)   f32  shuf[b, i] = pred[b, perm[b, i]]
    """
    perm = perm_ref[...]                                   # (TB, L) i32
    neg = neg_ref[...]                                     # (TB, L-1) f32

    # pred[b, 0] = pos[b]; pred[b, j] = neg[b, j-1]  (never materialized).
    # Gather via an unrolled select over the static index j: pure VPU, exact f32.
    acc = jnp.where(perm == 0, pos_ref[...], jnp.float32(0.0))
    for j in range(1, L):
        acc = jnp.where(perm == j, neg[:, j - 1 : j], acc)
    shuf_ref[...] = acc


def triplet_ce_adapt_batched(anchor_pos, anchor_neg, perm, *, max_block=256):
    """Batched TripletCEAdapt forward.

    anchor_pos: (B, 1) or (B,) f32; anchor_neg: (B, neg_samples) f32;
    perm: (B, L) int, each row a permutation of [0, L), L = neg_samples + 1.
    Returns (shuffled (B, L) f32, targets (B,) i32).
    """
    anchor_pos = jnp.asarray(anchor_pos, jnp.float32).reshape(-1, 1)
    anchor_neg = jnp.asarray(anchor_neg, jnp.float32)
    perm = jnp.asarray(perm, jnp.int32)

    B, neg_samples = anchor_neg.shape
    L = neg_samples + 1
    assert neg_samples >= 1
    assert anchor_pos.shape == (B, 1)
    assert perm.shape == (B, L)

    # Batch tile: multiple of 8 sublanes, capped at max_block per grid step.
    TB = min(max_block, _round_up(B, 8))
    B_pad = _round_up(B, TB)
    if B_pad != B:
        pad = B_pad - B
        anchor_pos = jnp.pad(anchor_pos, ((0, pad), (0, 0)))
        anchor_neg = jnp.pad(anchor_neg, ((0, pad), (0, 0)))
        perm = jnp.pad(perm, ((0, pad), (0, 0)))   # pad rows read index 0: harmless

    shuf = pl.pallas_call(
        functools.partial(_triplet_ce_kernel, L=L),
        out_shape=jax.ShapeDtypeStruct((B_pad, L), jnp.float32),
        grid=(B_pad // TB,),
        in_specs=[
            pl.BlockSpec((TB, 1), lambda i: (i, 0)),
            pl.BlockSpec((TB, neg_samples), lambda i: (i, 0)),
            pl.BlockSpec((TB, L), lambda i: (i, 0)),
        ],
        out_specs=pl.BlockSpec((TB, L), lambda i: (i, 0)),
        compiler_params=pltpu.CompilerParams(
            dimension_semantics=("parallel",)),
    )(anchor_pos, anchor_neg, perm)

    # targets depend only on the permutation -> wrapper-side, no extra VMEM output.
    targets = jnp.argmax(perm[:B] == 0, axis=1).astype(jnp.int32)
    return shuf[:B], targets


def triplet_ce_adapt(anchor_pos, anchor_neg, perm):
    """Module-exact single-triplet forward.

    anchor_pos: (1,) f32, anchor_neg: (neg_samples,) f32, perm: (L,) int.
    Returns (shuffled_preds (1, L) f32, targets (1,) i32).
    """
    shuf, tgt = triplet_ce_adapt_batched(
        anchor_pos.reshape(1, -1), anchor_neg.reshape(1, -1), perm.reshape(1, -1))
    return shuf.reshape(1, -1), tgt.reshape(1)


if __name__ == "__main__":
    key = jax.random.PRNGKey(0)
    k_pos, k_neg, k_perm, kb_pos, kb_neg, kb_perm = jax.random.split(key, 6)

    neg_samples = 7                      # -> L = 8
    L = neg_samples + 1

    # --- module-exact single-triplet call (TripletCEAdapt.forward) ---
    anchor_pos = jax.random.normal(k_pos, (1,), jnp.float32)
    anchor_neg = jax.random.normal(k_neg, (neg_samples,), jnp.float32)
    perm = jax.random.permutation(k_perm, L).astype(jnp.int32)  # deterministic "randperm"

    shuffled_preds, targets = triplet_ce_adapt(anchor_pos, anchor_neg, perm)
    jax.block_until_ready((shuffled_preds, targets))

    predictions = jnp.concatenate([anchor_pos, anchor_neg], axis=0)
    ref_shuf = predictions[perm].reshape(1, -1)
    ref_tgt = jnp.argmax(perm == 0)
    assert shuffled_preds.shape == (1, L)
    assert np.array_equal(np.asarray(shuffled_preds), np.asarray(ref_shuf))  # bit-exact
    assert int(targets[0]) == int(ref_tgt)

    # --- batched call: many triplets per pallas_call amortize dispatch/DMA ---
    B = 64
    b_pos = jax.random.normal(kb_pos, (B, 1), jnp.float32)
    b_neg = jax.random.normal(kb_neg, (B, neg_samples), jnp.float32)
    b_perm = jax.random.permutation(
        kb_perm,
        jnp.broadcast_to(jnp.arange(L, dtype=jnp.int32), (B, L)),
        axis=1, independent=True)

    b_shuf, b_tgt = triplet_ce_adapt_batched(b_pos, b_neg, b_perm)
    jax.block_until_ready((b_shuf, b_tgt))

    b_pred = jnp.concatenate([b_pos, b_neg], axis=1)
    ref_b_shuf = jnp.take_along_axis(b_pred, b_perm, axis=1)
    ref_b_tgt = jnp.argmax(b_perm == 0, axis=1)
    assert np.array_equal(np.asarray(b_shuf), np.asarray(ref_b_shuf))
    assert np.array_equal(np.asarray(b_tgt), np.asarray(ref_b_tgt))

    print("KERNEL_OK")
</pallas_src>

<mosaic_0001>
module attributes {stable_mosaic.version = 11 : i64} {
  func.func @_triplet_ce_kernel(%arg0: i32, %arg1: memref<8x1xf32, #tpu.memory_space<vmem>>, %arg2: memref<8x7xf32, #tpu.memory_space<vmem>>, %arg3: memref<8x8xi32, #tpu.memory_space<vmem>>, %arg4: memref<8x8xf32, #tpu.memory_space<vmem>>) attributes {dimension_semantics = [#tpu.dimension_semantics<parallel>], iteration_bounds = array<i64: 1>, scalar_prefetch = 0 : i64, scratch_operands = 0 : i64, tpu.core_type = #tpu.core_type<tc>, window_params = [{transform_indices = @transform_0, window_bounds = array<i64: 8, 1>}, {transform_indices = @transform_1, window_bounds = array<i64: 8, 7>}, {transform_indices = @transform_2, window_bounds = array<i64: 8, 8>}, {transform_indices = @transform_3, window_bounds = array<i64: 8, 8>}]} {
    %c0 = arith.constant 0 : index
    %c0_0 = arith.constant 0 : index
    %0 = vector.load %arg3[%c0, %c0_0] : memref<8x8xi32, #tpu.memory_space<vmem>>, vector<8x8xi32>
    %c0_1 = arith.constant 0 : index
    %c0_2 = arith.constant 0 : index
    %1 = vector.load %arg2[%c0_1, %c0_2] : memref<8x7xf32, #tpu.memory_space<vmem>>, vector<8x7xf32>
    %c0_i32 = arith.constant 0 : i32
    %2 = vector.broadcast %c0_i32 : i32 to vector<8x8xi32>
    %3 = arith.cmpi eq, %0, %2 : vector<8x8xi32>
    %c0_3 = arith.constant 0 : index
    %c0_4 = arith.constant 0 : index
    %4 = vector.load %arg1[%c0_3, %c0_4] : memref<8x1xf32, #tpu.memory_space<vmem>>, vector<8x1xf32>
    %cst = arith.constant 0.000000e+00 : f32
    %5 = vector.shape_cast %4 : vector<8x1xf32> to vector<8x1xf32>
    %6 = vector.broadcast %5 : vector<8x1xf32> to vector<8x8xf32>
    %7 = vector.broadcast %cst : f32 to vector<8x8xf32>
    %8 = arith.select %3, %6, %7 : vector<8x8xi1>, vector<8x8xf32>
    %c1_i32 = arith.constant 1 : i32
    %9 = vector.broadcast %c1_i32 : i32 to vector<8x8xi32>
    %10 = arith.cmpi eq, %0, %9 : vector<8x8xi32>
    %11 = vector.extract_strided_slice %1 {offsets = [0, 0], sizes = [8, 1], strides = [1, 1]} : vector<8x7xf32> to vector<8x1xf32>
    %12 = vector.shape_cast %11 : vector<8x1xf32> to vector<8x1xf32>
    %13 = vector.broadcast %12 : vector<8x1xf32> to vector<8x8xf32>
    %14 = arith.select %10, %13, %8 : vector<8x8xi1>, vector<8x8xf32>
    %c2_i32 = arith.constant 2 : i32
    %15 = vector.broadcast %c2_i32 : i32 to vector<8x8xi32>
    %16 = arith.cmpi eq, %0, %15 : vector<8x8xi32>
    %17 = vector.extract_strided_slice %1 {offsets = [0, 1], sizes = [8, 1], strides = [1, 1]} : vector<8x7xf32> to vector<8x1xf32>
    %18 = vector.shape_cast %17 : vector<8x1xf32> to vector<8x1xf32>
    %19 = vector.broadcast %18 : vector<8x1xf32> to vector<8x8xf32>
    %20 = arith.select %16, %19, %14 : vector<8x8xi1>, vector<8x8xf32>
    %c3_i32 = arith.constant 3 : i32
    %21 = vector.broadcast %c3_i32 : i32 to vector<8x8xi32>
    %22 = arith.cmpi eq, %0, %21 : vector<8x8xi32>
    %23 = vector.extract_strided_slice %1 {offsets = [0, 2], sizes = [8, 1], strides = [1, 1]} : vector<8x7xf32> to vector<8x1xf32>
    %24 = vector.shape_cast %23 : vector<8x1xf32> to vector<8x1xf32>
    %25 = vector.broadcast %24 : vector<8x1xf32> to vector<8x8xf32>
    %26 = arith.select %22, %25, %20 : vector<8x8xi1>, vector<8x8xf32>
    %c4_i32 = arith.constant 4 : i32
    %27 = vector.broadcast %c4_i32 : i32 to vector<8x8xi32>
    %28 = arith.cmpi eq, %0, %27 : vector<8x8xi32>
    %29 = vector.extract_strided_slice %1 {offsets = [0, 3], sizes = [8, 1], strides = [1, 1]} : vector<8x7xf32> to vector<8x1xf32>
    %30 = vector.shape_cast %29 : vector<8x1xf32> to vector<8x1xf32>
    %31 = vector.broadcast %30 : vector<8x1xf32> to vector<8x8xf32>
    %32 = arith.select %28, %31, %26 : vector<8x8xi1>, vector<8x8xf32>
    %c5_i32 = arith.constant 5 : i32
    %33 = vector.broadcast %c5_i32 : i32 to vector<8x8xi32>
    %34 = arith.cmpi eq, %0, %33 : vector<8x8xi32>
    %35 = vector.extract_strided_slice %1 {offsets = [0, 4], sizes = [8, 1], strides = [1, 1]} : vector<8x7xf32> to vector<8x1xf32>
    %36 = vector.shape_cast %35 : vector<8x1xf32> to vector<8x1xf32>
    %37 = vector.broadcast %36 : vector<8x1xf32> to vector<8x8xf32>
    %38 = arith.select %34, %37, %32 : vector<8x8xi1>, vector<8x8xf32>
    %c6_i32 = arith.constant 6 : i32
    %39 = vector.broadcast %c6_i32 : i32 to vector<8x8xi32>
    %40 = arith.cmpi eq, %0, %39 : vector<8x8xi32>
    %41 = vector.extract_strided_slice %1 {offsets = [0, 5], sizes = [8, 1], strides = [1, 1]} : vector<8x7xf32> to vector<8x1xf32>
    %42 = vector.shape_cast %41 : vector<8x1xf32> to vector<8x1xf32>
    %43 = vector.broadcast %42 : vector<8x1xf32> to vector<8x8xf32>
    %44 = arith.select %40, %43, %38 : vector<8x8xi1>, vector<8x8xf32>
    %c7_i32 = arith.constant 7 : i32
    %45 = vector.broadcast %c7_i32 : i32 to vector<8x8xi32>
    %46 = arith.cmpi eq, %0, %45 : vector<8x8xi32>
    %47 = vector.extract_strided_slice %1 {offsets = [0, 6], sizes = [8, 1], strides = [1, 1]} : vector<8x7xf32> to vector<8x1xf32>
    %48 = vector.shape_cast %47 : vector<8x1xf32> to vector<8x1xf32>
    %49 = vector.broadcast %48 : vector<8x1xf32> to vector<8x8xf32>
    %50 = arith.select %46, %49, %44 : vector<8x8xi1>, vector<8x8xf32>
    %c0_5 = arith.constant 0 : index
    %c0_6 = arith.constant 0 : index
    %51 = vector.load %arg4[%c0_5, %c0_6] : memref<8x8xf32, #tpu.memory_space<vmem>>, vector<8x8xf32>
    tpu.vector_store %arg4[%c0_5, %c0_6], %50 {strides = array<i32>} : memref<8x8xf32, #tpu.memory_space<vmem>>, vector<8x8xf32>,
    return
  }
  func.func @transform_0(%arg0: i32) -> (i32, i32) {
    %c0_i32 = arith.constant 0 : i32
    %c0_i32_0 = arith.constant 0 : i32
    return %arg0, %c0_i32 : i32, i32
  }
  func.func @transform_1(%arg0: i32) -> (i32, i32) {
    %c0_i32 = arith.constant 0 : i32
    %c0_i32_0 = arith.constant 0 : i32
    return %arg0, %c0_i32 : i32, i32
  }
  func.func @transform_2(%arg0: i32) -> (i32, i32) {
    %c0_i32 = arith.constant 0 : i32
    %c0_i32_0 = arith.constant 0 : i32
    return %arg0, %c0_i32 : i32, i32
  }
  func.func @transform_3(%arg0: i32) -> (i32, i32) {
    %c0_i32 = arith.constant 0 : i32
    %c0_i32_0 = arith.constant 0 : i32
    return %arg0, %c0_i32 : i32, i32
  }
}

</mosaic_0001>

<bundles_post_ra>
// kernel: tpu_custom_call.1
= control target key start
LH: loop header
LB: loop body
LE: loop exit
PB: predicated region body
PF: predicated region fallthrough
CT: control target
= control target key end

     0   :  { %v123_v2 = vmov 1   ;;  %v124_v3 = vmov 0   ;;  %s172_s0 = inlined_call_operand.vmem [shape: f32[8,1], index: 0, kind: input, shape index: {}]   ;;  %s173_s1 = inlined_call_operand.vmem [shape: f32[8,7], index: 1, kind: input, shape index: {}]   ;;  %s174_s2 = inlined_call_operand.vmem [shape: s32[8,8], index: 2, kind: input, shape index: {}]   ;;  %s175_s3 = inlined_call_operand.hbm [shape: f32[8,8], index: 3, kind: output, shape index: {}]  }
   0x1   :  { %v18_v0 = vld [vmem:[%s172_s0] sm:$0xff]  ;;  %93 = vset.pattern.permute.xlu1 %v123_v2  ;;  %92 = vset.pattern.permute.xlu0 %v124_v3 }
   0x2   :  { %v16_v1 = vld [vmem:[%s173_s1] sm:$0xff] }
   0x3   :  { %8 = vsyncpa [#allocation3], 0  ;;  %21 = vperm.xlu0 %92, %v18_v0   ;;  %34 = vperm.xlu1 %93, %v16_v1   ;;  %v125_v4 = vmov 2   ;;  %v126_v5 = vmov 3   ;;  %v127_v6 = vmov 4   ;;  %v128_v7 = vmov 6  }
   0x4   :  { %v129_v8 = vmov 5   ;;  %v15_v9 = vld [vmem:[%s174_s2] sm:$0xff]  ;;  %s130_s16 = smov [#allocation2]   ;;  %vm68_vm8 = vcmask 64512  }
   0x5   :  { %vm17_vm0 = vcmp.eq.s32.totalorder %v15_v9, 0  ;;  %vm25_vm1 = vcmp.eq.s32.totalorder %v15_v9, 1  ;;  %vm32_vm2 = vcmp.eq.s32.totalorder %v15_v9, 2  ;;  %vm38_vm3 = vcmp.eq.s32.totalorder %v15_v9, 3  ;;  %s76_s2 = sshll.u32 %s130_s16, 4  ;;  %s77_s2 = int_to_ptr.vmem [resolvable:$true] %s76_s2 }
   0x6   :  { %vm44_vm4 = vcmp.eq.s32.totalorder %v15_v9, 4  ;;  %vm50_vm5 = vcmp.eq.s32.totalorder %v15_v9, 5  ;;  %vm56_vm6 = vcmp.eq.s32.totalorder %v15_v9, 6  ;;  %vm62_vm7 = vcmp.eq.s32.totalorder %v15_v9, 7  ;;  %s99_s17 = scalar_lea.vmem %s77_s2, 128  ;;  %p104_p1 = scmp.lt.s32.totalorder %s77_s2, %s77_s2 }
   0x7   :  { %94 = vset.pattern.permute.xlu1 %v125_v4  ;;  %28 = vperm.xlu0 %92, %v16_v1   ;;  %p100_p0 = scmp.ne.s32.totalorder %s77_s2, %s99_s17  ;;  %p105_p2 = scmp.lt.s32.totalorder %s99_s17, %s99_s17 }
   0x8   :  { %40 = vperm.xlu1 %94, %v16_v1  }
   0x9   :  { %p106_p3 = por %p105_p2, %p104_p1 }
   0xb   :  { %95 = vset.pattern.permute.xlu0 %v126_v5  ;;  %p107_p4 = pnand %p106_p3, %p100_p0 }
   0xc   :  { %96 = vset.pattern.permute.xlu1 %v127_v6  ;;  %46 = vperm.xlu0 %95, %v16_v1  }
   0xd   :  { %52 = vperm.xlu1 %96, %v16_v1  }
  0x10   :  { %98 = vset.pattern.permute.xlu0 %v128_v7 }
  0x11   :  { %97 = vset.pattern.permute.xlu1 %v129_v8  ;;  %64 = vperm.xlu0 %98, %v16_v1  }
  0x12   :  { %58 = vperm.xlu1 %97, %v16_v1  }
  0x82   :  { %v22_v10 = vpop.permute.xlu0 %21  ;;  %v35_v11 = vpop.permute.xlu1 %34 }
  0x83   :  { %v24_v12 = vsel %vm17_vm0, %v22_v10, 0.0 }
  0x86   :  { %v29_v13 = vpop.permute.xlu0 %28 }
  0x87   :  { %v31_v14 = vsel %vm25_vm1, %v29_v13, %v24_v12  ;;  %v41_v15 = vpop.permute.xlu1 %40 }
  0x88   :  { %v37_v16 = vsel %vm32_vm2, %v35_v11, %v31_v14 }
  0x89   :  { %v43_v19 = vsel %vm38_vm3, %v41_v15, %v37_v16 }
  0x8b   :  { %v47_v17 = vpop.permute.xlu0 %46 }
  0x8c   :  { %v53_v18 = vpop.permute.xlu1 %52  ;;  %v49_v20 = vsel %vm44_vm4, %v47_v17, %v43_v19 }
  0x8d   :  { %v55_v22 = vsel %vm50_vm5, %v53_v18, %v49_v20 }
  0x90   :  { %v65_v21 = vpop.permute.xlu0 %64 }
  0x91   :  { %v59_v23 = vpop.permute.xlu1 %58 }
  0x92   :  { %v61_v24 = vsel %vm56_vm6, %v59_v23, %v55_v22 }
  0x93   :  { %v67_v25 = vsel %vm62_vm7, %v65_v21, %v61_v24 }
  0x94   :  { %69 = vst.msk [vmem:[#allocation2] sm:$0xff] %vm68_vm8, %v67_v25 }
  0x95   :  { %110 = shalt.err (!%p107_p4)
}
  0x96   :  { %s111_s20 = scalar_lea.hbm %s175_s3, 128 }
  0x97   :  { %p112_p5 = scmp.ne.s32.totalorder %s175_s3, %s111_s20  ;;  %p115_p6 = scmp.lt.u32.totalorder %s111_s20, %s175_s3 }
  0x99   :  { %p117_p7 = pnand %p115_p6, %p112_p5 }
  0x9b   :  { %120 = shalt.err (!%p117_p7)
}
  0x9c   :  { %79 = dma.vmem_to_hbm [thread:$0]  %s77_s2, 128, %s175_s3, [#allocation3]  }
  0x9d   :  { %121 = dma.done.wait [#allocation3], 128  }
  0x9e   :  { %122 = vsyncadd [#allocation3], 4294967168 }
  0x9f   :  { %83 = vsyncpa [#allocation3], 1 }

</bundles_post_ra>
